<compile_context>
chip_gen: v7x
topology: tpu7x:2x2x1
jax: 0.10.0
libtpu: 0.0.40
codegen_flags: <defaults>
</compile_context>

<pallas_src>
import functools

import jax
import jax.numpy as jnp
from jax.experimental import pallas as pl
from jax.experimental.pallas import tpu as pltpu

LAMBDA = 0.1
CLASS_WEIGHTS = (1.0, 1.25, 1.0)     # torch.tensor([1.0, 1.25, 1.0])
_LANE_WIDTH = 3 * 128                # K: lane-dense last dim (multiple of 3 & 128)
_MAX_ROWS_PER_TILE = 1024            # 1024 x 384 x 4B = 1.5 MiB per input block


def _restricted_loss_tile_kernel(o_ref, t_ref, r_ref, w_ref, out_ref, *,
                                 rows_total, lam, need_mask):
    """One grid step: fused weighted-MSE partial sum over a (tm, K) tile."""
    i = pl.program_id(0)
    tm, k = o_ref.shape

    def tile_sum(mask_rows):
        # Cast in-kernel (inputs arrive in their native dtype).
        o = o_ref[...].astype(jnp.float32)
        t = t_ref[...].astype(jnp.float32)
        r = r_ref[...].astype(jnp.float32)
        tw = t * w_ref[...]                      # tar * w  ((1, K) row broadcast)
        d1 = o - tw
        d2 = r - tw
        sq = d1 * d1 + lam * (d2 * d2)           # fused: single reduction below
        if mask_rows:                            # only on the ragged last tile
            row = jax.lax.broadcasted_iota(jnp.int32, (tm, k), 0) + i * tm
            sq = jnp.where(row < rows_total, sq, 0.0)
        out_ref[...] = jnp.sum(sq, keepdims=True).reshape(1, 1, 1)

    if need_mask:
        last = pl.num_programs(0) - 1

        @pl.when(i == last)
        def _():
            tile_sum(True)

        @pl.when(i != last)
        def _():
            tile_sum(False)
    else:
        tile_sum(False)


def restricted_loss(output, tar, rep, who=None):
    """Pallas port of restricted_loss.forward(output, tar, rep, who)."""
    del who                                     # unused by the PyTorch module
    C = len(CLASS_WEIGHTS)
    assert output.shape[-1] == C, "class weights are fixed to 3 classes"

    N = output.size                             # static element count (= M * C)
    o_flat = output.reshape(-1)
    t_flat = tar.reshape(-1)
    r_flat = rep.reshape(-1)

    K = _LANE_WIDTH
    rows = N // K
    n_main = rows * K                           # multiple of 3, weight-aligned
    w3 = jnp.asarray(CLASS_WEIGHTS, jnp.float32)

    total = jnp.float32(0.0)

    if rows > 0:
        if n_main == N:
            o_main = o_flat.reshape(rows, K)
            t_main = t_flat.reshape(rows, K)
            r_main = r_flat.reshape(rows, K)
        else:
            o_main = o_flat[:n_main].reshape(rows, K)
            t_main = t_flat[:n_main].reshape(rows, K)
            r_main = r_flat[:n_main].reshape(rows, K)

        tm = _MAX_ROWS_PER_TILE if rows >= _MAX_ROWS_PER_TILE else rows
        n_tiles = pl.cdiv(rows, tm)
        need_mask = (rows % tm) != 0
        w_row = jnp.tile(w3, K // C).reshape(1, K)   # period-3 weights, lane-dense

        kernel = functools.partial(_restricted_loss_tile_kernel,
                                   rows_total=rows, lam=LAMBDA,
                                   need_mask=need_mask)
        partials = pl.pallas_call(
            kernel,
            out_shape=jax.ShapeDtypeStruct((n_tiles, 1, 1), jnp.float32),
            grid_spec=pltpu.PrefetchScalarGridSpec(
                num_scalar_prefetch=0,
                grid=(n_tiles,),
                in_specs=[pl.BlockSpec((tm, K), lambda i: (i, 0)),
                          pl.BlockSpec((tm, K), lambda i: (i, 0)),
                          pl.BlockSpec((tm, K), lambda i: (i, 0)),
                          pl.BlockSpec((1, K), lambda i: (0, 0))],
                out_specs=pl.BlockSpec((1, 1, 1), lambda i: (i, 0, 0))),
            compiler_params=pltpu.CompilerParams(
                dimension_semantics=("parallel",),      # megacore split on v7x
                vmem_limit_bytes=32 * 1024 * 1024),
        )(o_main, t_main, r_main, w_row)
        total = total + jnp.sum(partials)

    if n_main != N:
        # Tiny (< 384 element) remainder: plain jnp, same weighting & fusion.
        n_tail = N - n_main                      # always a multiple of 3
        w_tail = jnp.tile(w3, n_tail // C)
        o_t = o_flat[n_main:].astype(jnp.float32)
        tw_t = t_flat[n_main:].astype(jnp.float32) * w_tail
        r_t = r_flat[n_main:].astype(jnp.float32)
        total = (total + jnp.sum((o_t - tw_t) ** 2)
                 + LAMBDA * jnp.sum((r_t - tw_t) ** 2))

    # Both MSE terms divide by the same numel N = M * C.
    return total / jnp.float32(N)


if __name__ == "__main__":
    key = jax.random.PRNGKey(0)
    k1, k2, k3 = jax.random.split(key, 3)

    # Small shapes consistent with the 3-class loss; N = 1200 elements ->
    # 3 lane-dense rows of 384 through the Pallas kernel + a 48-element tail.
    B, L, C = 4, 100, 3
    output = jax.nn.softmax(jax.random.normal(k1, (B, L, C), jnp.float32), -1)
    tar = jax.nn.one_hot(jax.random.randint(k2, (B, L), 0, C), C,
                         dtype=jnp.float32)
    rep = jax.nn.softmax(jax.random.normal(k3, (B, L, C), jnp.float32), -1)
    who = jnp.zeros((B,), jnp.int32)            # unused by the loss, as in torch

    loss_fn = jax.jit(restricted_loss)
    loss = jax.block_until_ready(loss_fn(output, tar, rep, who))

    # Pure-JAX reference of the PyTorch forward pass.
    w_ref = jnp.asarray(CLASS_WEIGHTS, jnp.float32)
    tw = tar * w_ref
    ref = jnp.mean((output - tw) ** 2) + LAMBDA * jnp.mean((rep - tw) ** 2)

    assert loss.shape == ()
    assert bool(jnp.isfinite(loss))
    assert bool(jnp.allclose(loss, ref, rtol=1e-5, atol=1e-6))
    print("KERNEL_OK")
</pallas_src>

<mosaic_0001>
module attributes {stable_mosaic.version = 11 : i64} {
  func.func @_restricted_loss_tile_kernel(%arg0: i32, %arg1: memref<3x384xf32, #tpu.memory_space<vmem>>, %arg2: memref<3x384xf32, #tpu.memory_space<vmem>>, %arg3: memref<3x384xf32, #tpu.memory_space<vmem>>, %arg4: memref<1x384xf32, #tpu.memory_space<vmem>>, %arg5: memref<1x1x1xf32, #tpu.memory_space<vmem>>) attributes {dimension_semantics = [#tpu.dimension_semantics<parallel>], iteration_bounds = array<i64: 1>, scalar_prefetch = 0 : i64, scratch_operands = 0 : i64, tpu.core_type = #tpu.core_type<tc>, window_params = [{transform_indices = @transform_0, window_bounds = array<i64: 3, 384>}, {transform_indices = @transform_1, window_bounds = array<i64: 3, 384>}, {transform_indices = @transform_2, window_bounds = array<i64: 3, 384>}, {pipeline_mode = #tpu.pipeline_mode<synchronous>, transform_indices = @transform_3, window_bounds = array<i64: 1, 384>}, {transform_indices = @transform_4, window_bounds = array<i64: 1, 1, 1>}]} {
    %c0 = arith.constant 0 : index
    %c0_0 = arith.constant 0 : index
    %0 = vector.load %arg1[%c0, %c0_0] : memref<3x384xf32, #tpu.memory_space<vmem>>, vector<3x384xf32>
    %c0_1 = arith.constant 0 : index
    %c0_2 = arith.constant 0 : index
    %1 = vector.load %arg2[%c0_1, %c0_2] : memref<3x384xf32, #tpu.memory_space<vmem>>, vector<3x384xf32>
    %c0_3 = arith.constant 0 : index
    %c0_4 = arith.constant 0 : index
    %2 = vector.load %arg3[%c0_3, %c0_4] : memref<3x384xf32, #tpu.memory_space<vmem>>, vector<3x384xf32>
    %c0_5 = arith.constant 0 : index
    %c0_6 = arith.constant 0 : index
    %3 = vector.load %arg4[%c0_5, %c0_6] : memref<1x384xf32, #tpu.memory_space<vmem>>, vector<1x384xf32>
    %4 = vector.broadcast %3 : vector<1x384xf32> to vector<3x384xf32>
    %5 = arith.mulf %1, %4 : vector<3x384xf32>
    %6 = arith.subf %0, %5 : vector<3x384xf32>
    %7 = arith.subf %2, %5 : vector<3x384xf32>
    %8 = arith.mulf %6, %6 : vector<3x384xf32>
    %9 = arith.mulf %7, %7 : vector<3x384xf32>
    %cst = arith.constant 1.000000e-01 : f32
    %10 = vector.broadcast %cst : f32 to vector<3x384xf32>
    %11 = arith.mulf %10, %9 : vector<3x384xf32>
    %12 = arith.addf %8, %11 : vector<3x384xf32>
    %13 = vector.shape_cast %12 : vector<3x384xf32> to vector<1x3x384xf32>
    %cst_7 = arith.constant dense<0.000000e+00> : vector<1xf32>
    %14 = vector.multi_reduction <add>, %13, %cst_7 [1, 2] : vector<1x3x384xf32> to vector<1xf32>
    %15 = vector.shape_cast %14 : vector<1xf32> to vector<1x1x1xf32>
    %16 = vector.extract %15[0, 0, 0] : f32 from vector<1x1x1xf32>
    %17 = vector.broadcast %16 : f32 to vector<1x1xf32>
    %18 = vector.shape_cast %17 : vector<1x1xf32> to vector<1x1x1xf32>
    %c0_8 = arith.constant 0 : index
    %c0_9 = arith.constant 0 : index
    %c0_10 = arith.constant 0 : index
    %19 = vector.load %arg5[%c0_8, %c0_9, %c0_10] : memref<1x1x1xf32, #tpu.memory_space<vmem>>, vector<1x1x1xf32>
    tpu.vector_store %arg5[%c0_8, %c0_9, %c0_10], %18 {strides = array<i32>} : memref<1x1x1xf32, #tpu.memory_space<vmem>>, vector<1x1x1xf32>,
    return
  }
  func.func @transform_0(%arg0: i32) -> (i32, i32) {
    %c0_i32 = arith.constant 0 : i32
    %c0_i32_0 = arith.constant 0 : i32
    return %arg0, %c0_i32 : i32, i32
  }
  func.func @transform_1(%arg0: i32) -> (i32, i32) {
    %c0_i32 = arith.constant 0 : i32
    %c0_i32_0 = arith.constant 0 : i32
    return %arg0, %c0_i32 : i32, i32
  }
  func.func @transform_2(%arg0: i32) -> (i32, i32) {
    %c0_i32 = arith.constant 0 : i32
    %c0_i32_0 = arith.constant 0 : i32
    return %arg0, %c0_i32 : i32, i32
  }
  func.func @transform_3(%arg0: i32) -> (i32, i32) {
    %c0_i32 = arith.constant 0 : i32
    %c0_i32_0 = arith.constant 0 : i32
    %c0_i32_1 = arith.constant 0 : i32
    return %c0_i32, %c0_i32_0 : i32, i32
  }
  func.func @transform_4(%arg0: i32) -> (i32, i32, i32) {
    %c0_i32 = arith.constant 0 : i32
    %c0_i32_0 = arith.constant 0 : i32
    %c0_i32_1 = arith.constant 0 : i32
    return %arg0, %c0_i32, %c0_i32_0 : i32, i32, i32
  }
}

</mosaic_0001>

<bundles_post_ra>
// kernel: tile.14
= control target key start
LH: loop header
LB: loop body
LE: loop exit
PB: predicated region body
PF: predicated region fallthrough
CT: control target
= control target key end

     0   :  { %s28_s0 = inlined_call_operand.vmem [shape: f32[3], index: 0, kind: input, shape index: {}]   ;;  %s29_s1 = inlined_call_operand.vmem [shape: f32[16,3], index: 1, kind: output, shape index: {}]  }
   0x1   :  { %v4_v0 = vld [vmem:[%s28_s0] ss:$0 sm:$0xff] }
   0x2   :  { %5 = vst [vmem:[%s29_s1] sm:$0xff] %v4_v0  ;;  %8 = vst [vmem:[%s29_s1 + $0x8] sm:$0xff] %v4_v0 }

// kernel: tile.15
= control target key start
LH: loop header
LB: loop body
LE: loop exit
PB: predicated region body
PF: predicated region fallthrough
CT: control target
= control target key end

     0   :  { %s131_s10 = smov 45   ;;  %s132_s11 = smov 39   ;;  %vm3_vm0 = vcmask 23552   ;;  %vm9_vm1 = vcmask 392552   ;;  %vm15_vm2 = vcmask 367952   ;;  %vm21_vm3 = vcmask 343352   ;;  %s207_s0 = inlined_call_operand.vmem [shape: f32[16,3], index: 0, kind: input, shape index: {}]   ;;  %s208_s1 = inlined_call_operand.vmem [shape: f32[48], index: 1, kind: output, shape index: {}]  }
   0x1   :  { %v101_v0 = vld [vmem:[%s207_s0 + $0xf] sm:$0x1]   ;;  %v103_v1 = vld [vmem:[%s207_s0 + $0xd] sm:$0x1]   ;;  %v102_v2 = vld [vmem:[%s207_s0 + $0xe] sm:$0x1]  }
   0x2   :  { %7 = vrot.lane.b32.xlu0 %v101_v0, %s131_s10  ;;  %19 = vrot.lane.b32.xlu1 %v103_v1, %s132_s11  ;;  %v104_v3 = vld [vmem:[%s207_s0 + $0xc] sm:$0x1]   ;;  %s133_s16 = smov 42   ;;  %s134_s17 = smov 36   ;;  %v105_v4 = vld [vmem:[%s207_s0 + $0xb] sm:$0x1]  }
   0x3   :  { %v106_v5 = vld [vmem:[%s207_s0 + $0xa] sm:$0x1]   ;;  %v2_v6 = vld [vmem:[%s207_s0] sm:$0x1]   ;;  %s135_s24 = smov 33   ;;  %s136_s25 = smov 30  }
   0x4   :  { %4 = vst.msk [vmem:[#allocation0] sm:$0x1] %vm3_vm0, %v2_v6   ;;  %v107_v7 = vld [vmem:[%s207_s0 + $0x9] sm:$0x1]   ;;  %v108_v8 = vld [vmem:[%s207_s0 + $0x8] sm:$0x1]  }
   0x5   :  { %s137_s30 = smov 27   ;;  %s138_s2 = smov 24   ;;  %v109_v9 = vld [vmem:[%s207_s0 + $0x7] sm:$0x1]   ;;  %v110_v10 = vld [vmem:[%s207_s0 + $0x6] sm:$0x1]  }
   0x6   :  { %13 = vrot.lane.b32.xlu0 %v102_v2, %s133_s16  ;;  %25 = vrot.lane.b32.xlu1 %v104_v3, %s134_s17  ;;  %s139_s7 = smov 21   ;;  %s140_s8 = smov 18   ;;  %v111_v11 = vld [vmem:[%s207_s0 + $0x5] sm:$0x1]   ;;  %v112_v12 = vld [vmem:[%s207_s0 + $0x4] sm:$0x1]  }
   0x7   :  { %s141_s13 = smov 15   ;;  %s142_s14 = smov 12   ;;  %v113_v13 = vld [vmem:[%s207_s0 + $0x3] sm:$0x1]   ;;  %v114_v14 = vld [vmem:[%s207_s0 + $0x2] sm:$0x1]  }
   0x8   :  { %s143_s19 = smov 9   ;;  %s144_s20 = smov 6   ;;  %v115_v15 = vld [vmem:[%s207_s0 + $0x1] sm:$0x1]   ;;  %vm27_vm4 = vcmask 318752   ;;  %vm33_vm5 = vcmask 294152  }
   0x9   :  { %s145_s0 = smov 3   ;;  %vm39_vm6 = vcmask 269552   ;;  %vm45_vm7 = vcmask 244952   ;;  %vm51_vm8 = vcmask 220352   ;;  %vm57_vm9 = vcmask 195752  }
   0xa   :  { %31 = vrot.lane.b32.xlu0 %v105_v4, %s135_s24  ;;  %37 = vrot.lane.b32.xlu1 %v106_v5, %s136_s25  ;;  %vm63_vm10 = vcmask 171152   ;;  %vm69_vm11 = vcmask 146552   ;;  %vm75_vm12 = vcmask 121952   ;;  %vm81_vm13 = vcmask 97352  }
   0xb   :  { %vm87_vm14 = vcmask 72752   ;;  %vm93_vm15 = vcmask 48152  }
   0xe   :  { %43 = vrot.lane.b32.xlu0 %v107_v7, %s137_s30  ;;  %49 = vrot.lane.b32.xlu1 %v108_v8, %s138_s2 }
  0x12   :  { %55 = vrot.lane.b32.xlu0 %v109_v9, %s139_s7  ;;  %61 = vrot.lane.b32.xlu1 %v110_v10, %s140_s8 }
  0x16   :  { %67 = vrot.lane.b32.xlu0 %v111_v11, %s141_s13  ;;  %73 = vrot.lane.b32.xlu1 %v112_v12, %s142_s14 }
  0x1a   :  { %79 = vrot.lane.b32.xlu0 %v113_v13, %s143_s19  ;;  %85 = vrot.lane.b32.xlu1 %v114_v14, %s144_s20 }
  0x1e   :  { %91 = vrot.lane.b32.xlu0 %v115_v15, %s145_s0 }
  0x74   :  { %v8_v16 = vpop.permute.xlu0 %7   ;;  %v20_v17 = vpop.permute.xlu1 %19  }
  0x75   :  { %10 = vst.msk [vmem:[#allocation0] sm:$0x1] %vm9_vm1, %v8_v16  }
  0x78   :  { %v14_v18 = vpop.permute.xlu0 %13   ;;  %v26_v19 = vpop.permute.xlu1 %25  }
  0x79   :  { %16 = vst.msk [vmem:[#allocation0] sm:$0x1] %vm15_vm2, %v14_v18  }
  0x7a   :  { %22 = vst.msk [vmem:[#allocation0] sm:$0x1] %vm21_vm3, %v20_v17  }
  0x7b   :  { %28 = vst.msk [vmem:[#allocation0] sm:$0x1] %vm27_vm4, %v26_v19  }
  0x7c   :  { %v32_v20 = vpop.permute.xlu0 %31   ;;  %v38_v21 = vpop.permute.xlu1 %37  }
  0x7d   :  { %34 = vst.msk [vmem:[#allocation0] sm:$0x1] %vm33_vm5, %v32_v20  }
  0x7e   :  { %40 = vst.msk [vmem:[#allocation0] sm:$0x1] %vm39_vm6, %v38_v21  }
  0x80   :  { %v44_v22 = vpop.permute.xlu0 %43   ;;  %v50_v23 = vpop.permute.xlu1 %49  }
  0x81   :  { %46 = vst.msk [vmem:[#allocation0] sm:$0x1] %vm45_vm7, %v44_v22  }
  0x82   :  { %52 = vst.msk [vmem:[#allocation0] sm:$0x1] %vm51_vm8, %v50_v23  }
  0x84   :  { %v56_v24 = vpop.permute.xlu0 %55   ;;  %v62_v25 = vpop.permute.xlu1 %61  }
  0x85   :  { %58 = vst.msk [vmem:[#allocation0] sm:$0x1] %vm57_vm9, %v56_v24  }
  0x86   :  { %64 = vst.msk [vmem:[#allocation0] sm:$0x1] %vm63_vm10, %v62_v25  }
  0x88   :  { %v68_v26 = vpop.permute.xlu0 %67   ;;  %v74_v27 = vpop.permute.xlu1 %73  }
  0x89   :  { %70 = vst.msk [vmem:[#allocation0] sm:$0x1] %vm69_vm11, %v68_v26  }
  0x8a   :  { %76 = vst.msk [vmem:[#allocation0] sm:$0x1] %vm75_vm12, %v74_v27  }
  0x8c   :  { %v80_v28 = vpop.permute.xlu0 %79   ;;  %v86_v29 = vpop.permute.xlu1 %85  }
  0x8d   :  { %82 = vst.msk [vmem:[#allocation0] sm:$0x1] %vm81_vm13, %v80_v28  }
  0x8e   :  { %88 = vst.msk [vmem:[#allocation0] sm:$0x1] %vm87_vm14, %v86_v29  }
  0x90   :  { %v92_v30 = vpop.permute.xlu0 %91  }
  0x91   :  { %94 = vst.msk [vmem:[#allocation0] sm:$0x1] %vm93_vm15, %v92_v30  }
  0x98   :  { %v98_v31 = vld [vmem:[#allocation0] sm:$0x1] }
  0x99   :  { %100 = vst [vmem:[%s208_s1] sm:$0x1] %v98_v31 }

// kernel: tile.10
= control target key start
LH: loop header
LB: loop body
LE: loop exit
PB: predicated region body
PF: predicated region fallthrough
CT: control target
= control target key end

     0   :  { %s112_s0 = inlined_call_operand.vmem [shape: f32[3], index: 0, kind: input, shape index: {}]   ;;  %s113_s1 = inlined_call_operand.vmem [shape: f32[128,3], index: 1, kind: output, shape index: {}]  }
   0x1   :  { %v4_v0 = vld [vmem:[%s112_s0] ss:$0 sm:$0xff] }
   0x2   :  { %5 = vst [vmem:[%s113_s1] sm:$0xff] %v4_v0  ;;  %36 = vst [vmem:[%s113_s1 + $0x8] sm:$0xff] %v4_v0 }
   0x3   :  { %37 = vst [vmem:[%s113_s1 + $0x10] sm:$0xff] %v4_v0  ;;  %38 = vst [vmem:[%s113_s1 + $0x18] sm:$0xff] %v4_v0 }
   0x4   :  { %39 = vst [vmem:[%s113_s1 + $0x20] sm:$0xff] %v4_v0  ;;  %40 = vst [vmem:[%s113_s1 + $0x28] sm:$0xff] %v4_v0 }
   0x5   :  { %41 = vst [vmem:[%s113_s1 + $0x30] sm:$0xff] %v4_v0  ;;  %42 = vst [vmem:[%s113_s1 + $0x38] sm:$0xff] %v4_v0 }
   0x6   :  { %43 = vst [vmem:[%s113_s1 + $0x40] sm:$0xff] %v4_v0  ;;  %44 = vst [vmem:[%s113_s1 + $0x48] sm:$0xff] %v4_v0 }
   0x7   :  { %45 = vst [vmem:[%s113_s1 + $0x50] sm:$0xff] %v4_v0  ;;  %46 = vst [vmem:[%s113_s1 + $0x58] sm:$0xff] %v4_v0 }
   0x8   :  { %47 = vst [vmem:[%s113_s1 + $0x60] sm:$0xff] %v4_v0  ;;  %48 = vst [vmem:[%s113_s1 + $0x68] sm:$0xff] %v4_v0 }
   0x9   :  { %49 = vst [vmem:[%s113_s1 + $0x70] sm:$0xff] %v4_v0  ;;  %50 = vst [vmem:[%s113_s1 + $0x78] sm:$0xff] %v4_v0 }

// kernel: tile.11
= control target key start
LH: loop header
LB: loop body
LE: loop exit
PB: predicated region body
PF: predicated region fallthrough
CT: control target
= control target key end

     0   :  { %vm9_vm0 = vcmask 7168   ;;  %vm13_vm1 = vcmask 15360   ;;  %s1142_s14 = smov 127   ;;  %s1143_s15 = smov 125   ;;  %vm3_vm2 = vcmask 23552   ;;  %vm16_vm3 = vcmask 1048568   ;;  %s1682_s0 = inlined_call_operand.vmem [shape: f32[128,3], index: 0, kind: input, shape index: {}]   ;;  %s1683_s1 = inlined_call_operand.vmem [shape: f32[1,384], index: 1, kind: output, shape index: {}]  }
   0x1   :  { %v884_v0 = vld [vmem:[%s1682_s0 + $0x55] sm:$0x1]   ;;  %v888_v3 = vld [vmem:[%s1682_s0 + $0x7f] sm:$0x1]   ;;  %v886_v4 = vld [vmem:[%s1682_s0 + $0x2a] sm:$0x1]  }
   0x2   :  { %v885_v1 = vld [vmem:[%s1682_s0 + $0x55] sm:$0x1]   ;;  %34 = vrot.lane.b32.xlu1 %v888_v3, %s1143_s15  ;;  %v887_v5 = vld [vmem:[%s1682_s0 + $0x2a] sm:$0x1]   ;;  %v889_v7 = vld [vmem:[%s1682_s0 + $0x54] sm:$0x1]  }
   0x3   :  { %v10_v2 = vsel %vm9_vm0, %v885_v1, %v884_v0  ;;  %v24_v6 = vsel %vm13_vm1, %v887_v5, %v886_v4  ;;  %s1144_s20 = smov 126   ;;  %s1145_s21 = smov 124   ;;  %v890_v8 = vld [vmem:[%s1682_s0 + $0x29] sm:$0x1]   ;;  %v891_v9 = vld [vmem:[%s1682_s0 + $0x7e] sm:$0x1]  }
   0x4   :  { %11 = vrot.lane.b32.xlu0 %v10_v2, %s1142_s14  ;;  %s1146_s26 = smov 123   ;;  %s1147_s27 = smov 122   ;;  %v892_v10 = vld [vmem:[%s1682_s0 + $0x53] sm:$0x1]   ;;  %v893_v11 = vld [vmem:[%s1682_s0 + $0x28] sm:$0x1]  }
   0x5   :  { %s1148_s3 = smov 121   ;;  %s1149_s4 = smov 120   ;;  %v894_v12 = vld [vmem:[%s1682_s0 + $0x7d] sm:$0x1]   ;;  %v895_v13 = vld [vmem:[%s1682_s0 + $0x52] sm:$0x1]  }
   0x6   :  { %41 = vrot.lane.b32.xlu1 %v889_v7, %s1145_s21  ;;  %s1150_s9 = smov 119   ;;  %s1151_s10 = smov 118   ;;  %v896_v14 = vld [vmem:[%s1682_s0 + $0x27] sm:$0x1]   ;;  %v897_v15 = vld [vmem:[%s1682_s0 + $0x7c] sm:$0x1]  }
   0x7   :  { %s1152_s15 = smov 117   ;;  %s1153_s16 = smov 116   ;;  %v898_v16 = vld [vmem:[%s1682_s0 + $0x51] sm:$0x1]   ;;  %v899_v17 = vld [vmem:[%s1682_s0 + $0x26] sm:$0x1]  }
   0x8   :  { %25 = vrot.lane.b32.xlu0 %v24_v6, %s1144_s20  ;;  %s1154_s21 = smov 115   ;;  %s1155_s22 = smov 114   ;;  %v900_v18 = vld [vmem:[%s1682_s0 + $0x7b] sm:$0x1]   ;;  %v901_v19 = vld [vmem:[%s1682_s0 + $0x50] sm:$0x1]  }
   0x9   :  { %s1157_s28 = smov 112   ;;  %v902_v20 = vld [vmem:[%s1682_s0 + $0x25] sm:$0x1]   ;;  %v903_v21 = vld [vmem:[%s1682_s0 + $0x7a] sm:$0x1]   ;;  %s1158_s6 = smov 111  }
   0xa   :  { %54 = vrot.lane.b32.xlu1 %v891_v9, %s1147_s27  ;;  %s1156_s27 = smov 113   ;;  %v2_v22 = vld [vmem:[%s1682_s0] sm:$0x1]   ;;  %s1159_s7 = smov 110   ;;  %v904_v23 = vld [vmem:[%s1682_s0 + $0x4f] sm:$0x1]  }
   0xb   :  { %4 = vst.msk [vmem:[#allocation0] sm:$0x1] %vm3_vm2, %v2_v22   ;;  %v905_v24 = vld [vmem:[%s1682_s0 + $0x24] sm:$0x1]   ;;  %s1160_s12 = smov 109   ;;  %s1161_s13 = smov 108  }
   0xc   :  { %48 = vrot.lane.b32.xlu0 %v890_v8, %s1146_s26  ;;  %v906_v25 = vld [vmem:[%s1682_s0 + $0x79] sm:$0x1]   ;;  %v907_v26 = vld [vmem:[%s1682_s0 + $0x4e] sm:$0x1]   ;;  %s1162_s18 = smov 107   ;;  %s1163_s19 = smov 106  }
   0xd   :  { %v908_v27 = vld [vmem:[%s1682_s0 + $0x23] sm:$0x1]   ;;  %v909_v28 = vld [vmem:[%s1682_s0 + $0x78] sm:$0x1]   ;;  %s1164_s24 = smov 105   ;;  %s1165_s25 = smov 104  }
   0xe   :  { %68 = vrot.lane.b32.xlu1 %v893_v11, %s1149_s4  ;;  %v910_v29 = vld [vmem:[%s1682_s0 + $0x4d] sm:$0x1]   ;;  %v911_v30 = vld [vmem:[%s1682_s0 + $0x22] sm:$0x1]   ;;  %s1166_s30 = smov 103   ;;  %s1167_s2 = smov 102  }
   0xf   :  { %v912_v31 = vld [vmem:[%s1682_s0 + $0x77] sm:$0x1]   ;;  %v913_v32 = vld [vmem:[%s1682_s0 + $0x4c] sm:$0x1]   ;;  %s1169_s8 = smov 100   ;;  %s1171_s14 = smov 98  }
  0x10   :  { %61 = vrot.lane.b32.xlu0 %v892_v10, %s1148_s3  ;;  %v914_v33 = vld [vmem:[%s1682_s0 + $0x21] sm:$0x1]   ;;  %v915_v34 = vld [vmem:[%s1682_s0 + $0x76] sm:$0x1]   ;;  %v916_v35 = vld [vmem:[%s1682_s0 + $0x4b] sm:$0x1]  }
  0x11   :  { %v917_v36 = vld [vmem:[%s1682_s0 + $0x20] sm:$0x1]   ;;  %s1173_s20 = smov 96   ;;  %v918_v37 = vld [vmem:[%s1682_s0 + $0x75] sm:$0x1]   ;;  %s1175_s26 = smov 94  }
  0x12   :  { %81 = vrot.lane.b32.xlu1 %v895_v13, %s1151_s10  ;;  %v919_v38 = vld [vmem:[%s1682_s0 + $0x4a] sm:$0x1]   ;;  %v920_v39 = vld [vmem:[%s1682_s0 + $0x1f] sm:$0x1]   ;;  %v921_v40 = vld [vmem:[%s1682_s0 + $0x74] sm:$0x1]  }
  0x13   :  { %s1177_s3 = smov 92   ;;  %v922_v41 = vld [vmem:[%s1682_s0 + $0x49] sm:$0x1]   ;;  %v923_v42 = vld [vmem:[%s1682_s0 + $0x1e] sm:$0x1]   ;;  %s1187_s4 = smov 82  }
  0x14   :  { %74 = vrot.lane.b32.xlu0 %v894_v12, %s1150_s9  ;;  %s1179_s9 = smov 90   ;;  %v924_v43 = vld [vmem:[%s1682_s0 + $0x73] sm:$0x1]   ;;  %v925_v44 = vld [vmem:[%s1682_s0 + $0x48] sm:$0x1]   ;;  %s1189_s10 = smov 80  }
  0x15   :  { %v926_v45 = vld [vmem:[%s1682_s0 + $0x1d] sm:$0x1]   ;;  %v927_v46 = vld [vmem:[%s1682_s0 + $0x72] sm:$0x1]   ;;  %v928_v47 = vld [vmem:[%s1682_s0 + $0x47] sm:$0x1]  }
  0x16   :  { %94 = vrot.lane.b32.xlu1 %v897_v15, %s1153_s16  ;;  %v929_v48 = vld [vmem:[%s1682_s0 + $0x1c] sm:$0x1]   ;;  %v930_v49 = vld [vmem:[%s1682_s0 + $0x71] sm:$0x1]   ;;  %v931_v50 = vld [vmem:[%s1682_s0 + $0x46] sm:$0x1]  }
  0x17   :  { %v932_v51 = vld [vmem:[%s1682_s0 + $0x1b] sm:$0x1]   ;;  %v933_v52 = vld [vmem:[%s1682_s0 + $0x70] sm:$0x1]   ;;  %v934_v53 = vld [vmem:[%s1682_s0 + $0x45] sm:$0x1]  }
  0x18   :  { %88 = vrot.lane.b32.xlu0 %v896_v14, %s1152_s15  ;;  %s1181_s15 = smov 88   ;;  %v935_v54 = vld [vmem:[%s1682_s0 + $0x1a] sm:$0x1]   ;;  %s1191_s16 = smov 78   ;;  %v936_v55 = vld [vmem:[%s1682_s0 + $0x6f] sm:$0x1]  }
  0x19   :  { %v937_v56 = vld [vmem:[%s1682_s0 + $0x44] sm:$0x1]   ;;  %v938_v57 = vld [vmem:[%s1682_s0 + $0x19] sm:$0x1]   ;;  %v939_v58 = vld [vmem:[%s1682_s0 + $0x6e] sm:$0x1]  }
  0x1a   :  { %108 = vrot.lane.b32.xlu1 %v899_v17, %s1155_s22  ;;  %s1193_s22 = smov 76   ;;  %v940_v59 = vld [vmem:[%s1682_s0 + $0x43] sm:$0x1]   ;;  %v941_v60 = vld [vmem:[%s1682_s0 + $0x18] sm:$0x1]   ;;  %s1197_s5 = smov 72  }
  0x1b   :  { %v942_v61 = vld [vmem:[%s1682_s0 + $0x6d] sm:$0x1]   ;;  %v943_v62 = vld [vmem:[%s1682_s0 + $0x42] sm:$0x1]   ;;  %s1199_s11 = smov 70   ;;  %vm36_vm4 = vcmask 1048552  }
  0x1c   :  { %101 = vrot.lane.b32.xlu0 %v898_v16, %s1154_s21  ;;  %s1183_s21 = smov 86   ;;  %v944_v63 = vld [vmem:[%s1682_s0 + $0x17] sm:$0x1]   ;;  %v945_v0 = vld [vmem:[%s1682_s0 + $0x6c] sm:$0x1]   ;;  %vm30_vm5 = vcmask 1048560  }
  0x1d   :  { %s1201_s17 = smov 68   ;;  %v946_v3 = vld [vmem:[%s1682_s0 + $0x41] sm:$0x1]   ;;  %vm43_vm6 = vcmask 1040352   ;;  %v947_v4 = vld [vmem:[%s1682_s0 + $0x16] sm:$0x1]  }
  0x1e   :  { %121 = vrot.lane.b32.xlu1 %v901_v19, %s1157_s28  ;;  %s1195_s28 = smov 74   ;;  %vm50_vm7 = vcmask 1032152   ;;  %s1203_s23 = smov 66   ;;  %vm56_vm8 = vcmask 1023952   ;;  %v948_v7 = vld [vmem:[%s1682_s0 + $0x6b] sm:$0x1]  }
  0x1f   :  { %v949_v8 = vld [vmem:[%s1682_s0 + $0x40] sm:$0x1]   ;;  %vm63_vm9 = vcmask 1015752   ;;  %s1205_s29 = smov 64   ;;  %vm70_vm10 = vcmask 1007552   ;;  %vm76_vm11 = vcmask 999352  }
  0x20   :  { %114 = vrot.lane.b32.xlu0 %v900_v18, %s1156_s27  ;;  %s1185_s27 = smov 84   ;;  %v950_v11 = vld [vmem:[%s1682_s0 + $0x15] sm:$0x1]   ;;  %v951_v12 = vld [vmem:[%s1682_s0 + $0x6a] sm:$0x1]   ;;  %vm83_vm12 = vcmask 991152  }
  0x21   :  { %v952_v15 = vld [vmem:[%s1682_s0 + $0x3f] sm:$0x1]   ;;  %v953_v16 = vld [vmem:[%s1682_s0 + $0x14] sm:$0x1]   ;;  %vm90_vm13 = vcmask 982952   ;;  %vm96_vm14 = vcmask 974752  }
  0x22   :  { %134 = vrot.lane.b32.xlu1 %v903_v21, %s1159_s7  ;;  %s1168_s7 = smov 101   ;;  %v954_v19 = vld [vmem:[%s1682_s0 + $0x69] sm:$0x1]   ;;  %vm103_vm15 = vcmask 966552   ;;  %vm123_vm2 = vcmask 941952  }
  0x24   :  { %128 = vrot.lane.b32.xlu0 %v902_v20, %s1158_s6  ;;  %s1207_s6 = smov 62   ;;  %v955_v20 = vld [vmem:[%s1682_s0 + $0x3e] sm:$0x1]  }
  0x26   :  { %148 = vrot.lane.b32.xlu1 %v905_v24, %s1161_s13  ;;  %s1170_s13 = smov 99   ;;  %v957_v24 = vld [vmem:[%s1682_s0 + $0x68] sm:$0x1]  }
  0x28   :  { %141 = vrot.lane.b32.xlu0 %v904_v23, %s1160_s12  ;;  %s1209_s12 = smov 60   ;;  %v956_v23 = vld [vmem:[%s1682_s0 + $0x13] sm:$0x1]  }
  0x2a   :  { %161 = vrot.lane.b32.xlu1 %v907_v26, %s1163_s19  ;;  %s1172_s19 = smov 97  }
  0x2c   :  { %154 = vrot.lane.b32.xlu0 %v906_v25, %s1162_s18  ;;  %s1211_s18 = smov 58  }
  0x2e   :  { %174 = vrot.lane.b32.xlu1 %v909_v28, %s1165_s25  ;;  %s1174_s25 = smov 95   ;;  %v959_v28 = vld [vmem:[%s1682_s0 + $0x12] sm:$0x1]  }
  0x30   :  { %168 = vrot.lane.b32.xlu0 %v908_v27, %s1164_s24  ;;  %s1213_s24 = smov 56   ;;  %v958_v27 = vld [vmem:[%s1682_s0 + $0x3d] sm:$0x1]  }
  0x32   :  { %188 = vrot.lane.b32.xlu1 %v911_v30, %s1167_s2  ;;  %s1176_s2 = smov 93  }
  0x34   :  { %181 = vrot.lane.b32.xlu0 %v910_v29, %s1166_s30  ;;  %s1215_s30 = smov 54  }
  0x36   :  { %201 = vrot.lane.b32.xlu1 %v913_v32, %s1169_s8  ;;  %s1178_s8 = smov 91   ;;  %v961_v32 = vld [vmem:[%s1682_s0 + $0x3c] sm:$0x1]  }
  0x38   :  { %194 = vrot.lane.b32.xlu0 %v912_v31, %s1168_s7  ;;  %v960_v31 = vld [vmem:[%s1682_s0 + $0x67] sm:$0x1]   ;;  %s1217_s7 = smov 52  }
  0x3a   :  { %214 = vrot.lane.b32.xlu1 %v915_v34, %s1171_s14  ;;  %s1180_s14 = smov 89  }
  0x3c   :  { %208 = vrot.lane.b32.xlu0 %v914_v33, %s1170_s13  ;;  %s1219_s13 = smov 50  }
  0x3e   :  { %228 = vrot.lane.b32.xlu1 %v917_v36, %s1173_s20  ;;  %s1182_s20 = smov 87   ;;  %v963_v36 = vld [vmem:[%s1682_s0 + $0x66] sm:$0x1]  }
  0x40   :  { %221 = vrot.lane.b32.xlu0 %v916_v35, %s1172_s19  ;;  %v962_v35 = vld [vmem:[%s1682_s0 + $0x11] sm:$0x1]   ;;  %s1221_s19 = smov 48  }
  0x42   :  { %241 = vrot.lane.b32.xlu1 %v919_v38, %s1175_s26  ;;  %s1184_s26 = smov 85  }
  0x44   :  { %234 = vrot.lane.b32.xlu0 %v918_v37, %s1174_s25  ;;  %s1223_s25 = smov 46  }
  0x46   :  { %254 = vrot.lane.b32.xlu1 %v921_v40, %s1177_s3  ;;  %s1186_s3 = smov 83   ;;  %v965_v40 = vld [vmem:[%s1682_s0 + $0x10] sm:$0x1]  }
  0x48   :  { %248 = vrot.lane.b32.xlu0 %v920_v39, %s1176_s2  ;;  %v964_v39 = vld [vmem:[%s1682_s0 + $0x3b] sm:$0x1]   ;;  %s1225_s2 = smov 44  }
  0x4a   :  { %268 = vrot.lane.b32.xlu1 %v923_v42, %s1179_s9  ;;  %s1188_s9 = smov 81  }
  0x4c   :  { %261 = vrot.lane.b32.xlu0 %v922_v41, %s1178_s8  ;;  %s1227_s8 = smov 42  }
  0x4e   :  { %281 = vrot.lane.b32.xlu1 %v925_v44, %s1181_s15  ;;  %s1190_s15 = smov 79   ;;  %v967_v44 = vld [vmem:[%s1682_s0 + $0x3a] sm:$0x1]  }
  0x50   :  { %274 = vrot.lane.b32.xlu0 %v924_v43, %s1180_s14  ;;  %v966_v43 = vld [vmem:[%s1682_s0 + $0x65] sm:$0x1]   ;;  %s1229_s14 = smov 40  }
  0x52   :  { %294 = vrot.lane.b32.xlu1 %v927_v46, %s1183_s21  ;;  %s1192_s21 = smov 77  }
  0x54   :  { %288 = vrot.lane.b32.xlu0 %v926_v45, %s1182_s20  ;;  %s1231_s20 = smov 38  }
  0x56   :  { %308 = vrot.lane.b32.xlu1 %v929_v48, %s1185_s27  ;;  %s1194_s27 = smov 75   ;;  %v969_v48 = vld [vmem:[%s1682_s0 + $0x64] sm:$0x1]  }
  0x58   :  { %301 = vrot.lane.b32.xlu0 %v928_v47, %s1184_s26  ;;  %v968_v47 = vld [vmem:[%s1682_s0 + $0xf] sm:$0x1]   ;;  %s1233_s26 = smov 36  }
  0x5a   :  { %321 = vrot.lane.b32.xlu1 %v931_v50, %s1187_s4  ;;  %s1196_s4 = smov 73  }
  0x5c   :  { %314 = vrot.lane.b32.xlu0 %v930_v49, %s1186_s3  ;;  %s1235_s3 = smov 34  }
  0x5e   :  { %334 = vrot.lane.b32.xlu1 %v933_v52, %s1189_s10  ;;  %s1198_s10 = smov 71   ;;  %v971_v52 = vld [vmem:[%s1682_s0 + $0xe] sm:$0x1]  }
  0x60   :  { %328 = vrot.lane.b32.xlu0 %v932_v51, %s1188_s9  ;;  %v970_v51 = vld [vmem:[%s1682_s0 + $0x39] sm:$0x1]   ;;  %s1237_s9 = smov 32  }
  0x62   :  { %348 = vrot.lane.b32.xlu1 %v935_v54, %s1191_s16  ;;  %s1200_s16 = smov 69  }
  0x64   :  { %341 = vrot.lane.b32.xlu0 %v934_v53, %s1190_s15  ;;  %s1239_s15 = smov 30  }
  0x66   :  { %361 = vrot.lane.b32.xlu1 %v937_v56, %s1193_s22  ;;  %s1202_s22 = smov 67   ;;  %v973_v56 = vld [vmem:[%s1682_s0 + $0x38] sm:$0x1]  }
  0x68   :  { %354 = vrot.lane.b32.xlu0 %v936_v55, %s1192_s21  ;;  %v972_v55 = vld [vmem:[%s1682_s0 + $0x63] sm:$0x1]   ;;  %s1241_s21 = smov 28  }
  0x6a   :  { %374 = vrot.lane.b32.xlu1 %v939_v58, %s1195_s28  ;;  %s1204_s28 = smov 65  }
  0x6c   :  { %368 = vrot.lane.b32.xlu0 %v938_v57, %s1194_s27  ;;  %s1243_s27 = smov 26  }
  0x6e   :  { %388 = vrot.lane.b32.xlu1 %v941_v60, %s1197_s5  ;;  %s1206_s5 = smov 63   ;;  %v975_v60 = vld [vmem:[%s1682_s0 + $0x62] sm:$0x1]  }
  0x70   :  { %381 = vrot.lane.b32.xlu0 %v940_v59, %s1196_s4  ;;  %v974_v59 = vld [vmem:[%s1682_s0 + $0xd] sm:$0x1]   ;;  %s1245_s4 = smov 24  }
  0x72   :  { %401 = vrot.lane.b32.xlu1 %v943_v62, %s1199_s11  ;;  %s1208_s11 = smov 61  }
  0x74   :  { %394 = vrot.lane.b32.xlu0 %v942_v61, %s1198_s10  ;;  %v35_v2 = vpop.permute.xlu1 %34   ;;  %s1247_s10 = smov 22  }
  0x76   :  { %v12_v1 = vpop.permute.xlu0 %11   ;;  %414 = vrot.lane.b32.xlu1 %v945_v0, %s1201_s17  ;;  %s1210_s17 = smov 59   ;;  %v977_v0 = vld [vmem:[%s1682_s0 + $0xc] sm:$0x1]  }
  0x77   :  { %15 = vst.msk [vmem:[#allocation0 + $0x10] sm:$0x1] %vm13_vm1, %v12_v1   ;;  %vm116_vm1 = vcmask 950152  }
  0x78   :  { %18 = vst.msk [vmem:[#allocation0 + $0x8] sm:$0x1] %vm16_vm3, %v12_v1   ;;  %408 = vrot.lane.b32.xlu0 %v944_v63, %s1200_s16  ;;  %v42_v6 = vpop.permute.xlu1 %41   ;;  %vm130_vm3 = vcmask 933752   ;;  %v976_v63 = vld [vmem:[%s1682_s0 + $0x37] sm:$0x1]   ;;  %s1249_s16 = smov 20  }
  0x79   :  { %38 = vst.msk [vmem:[#allocation0 + $0x10] sm:$0x1] %vm36_vm4, %v35_v2   ;;  %vm136_vm4 = vcmask 925552  }
  0x7a   :  { %v26_v5 = vpop.permute.xlu0 %25   ;;  %428 = vrot.lane.b32.xlu1 %v947_v4, %s1203_s23  ;;  %s1212_s23 = smov 57   ;;  %v979_v4 = vld [vmem:[%s1682_s0 + $0x36] sm:$0x1]  }
  0x7b   :  { %29 = vst.msk [vmem:[#allocation0 + $0x8] sm:$0x1] %vm9_vm0, %v26_v5   ;;  %vm110_vm0 = vcmask 958352  }
  0x7c   :  { %31 = vst.msk [vmem:[#allocation0] sm:$0x1] %vm30_vm5, %v26_v5   ;;  %421 = vrot.lane.b32.xlu0 %v946_v3, %s1202_s22  ;;  %v55_v10 = vpop.permute.xlu1 %54   ;;  %vm143_vm5 = vcmask 917352   ;;  %v978_v3 = vld [vmem:[%s1682_s0 + $0x61] sm:$0x1]   ;;  %s1251_s22 = smov 18  }
  0x7d   :  { %45 = vst.msk [vmem:[#allocation0 + $0x8] sm:$0x1] %vm43_vm6, %v42_v6   ;;  %vm150_vm6 = vcmask 909152  }
  0x7e   :  { %v49_v9 = vpop.permute.xlu0 %48   ;;  %58 = vst.msk [vmem:[#allocation0 + $0x10] sm:$0x1] %vm56_vm8, %v55_v10   ;;  %441 = vrot.lane.b32.xlu1 %v949_v8, %s1205_s29  ;;  %s1214_s29 = smov 55   ;;  %vm163_vm8 = vcmask 892752   ;;  %v981_v8 = vld [vmem:[%s1682_s0 + $0x60] sm:$0x1]  }
  0x7f   :  { %51 = vst.msk [vmem:[#allocation0] sm:$0x1] %vm50_vm7, %v49_v9   ;;  %vm156_vm7 = vcmask 900952  }
  0x80   :  { %434 = vrot.lane.b32.xlu0 %v948_v7, %s1204_s28  ;;  %v69_v14 = vpop.permute.xlu1 %68   ;;  %v980_v7 = vld [vmem:[%s1682_s0 + $0xb] sm:$0x1]   ;;  %s1253_s28 = smov 16  }
  0x81   :  { %71 = vst.msk [vmem:[#allocation0] sm:$0x1] %vm70_vm10, %v69_v14   ;;  %vm176_vm10 = vcmask 876352  }
  0x82   :  { %v62_v13 = vpop.permute.xlu0 %61   ;;  %454 = vrot.lane.b32.xlu1 %v951_v12, %s1207_s6  ;;  %s1216_s6 = smov 53   ;;  %v983_v12 = vld [vmem:[%s1682_s0 + $0xa] sm:$0x1]  }
  0x83   :  { %65 = vst.msk [vmem:[#allocation0 + $0x8] sm:$0x1] %vm63_vm9, %v62_v13   ;;  %vm170_vm9 = vcmask 884552  }
  0x84   :  { %448 = vrot.lane.b32.xlu0 %v950_v11, %s1206_s5  ;;  %v82_v18 = vpop.permute.xlu1 %81   ;;  %v982_v11 = vld [vmem:[%s1682_s0 + $0x35] sm:$0x1]   ;;  %s1255_s5 = smov 14  }
  0x85   :  { %85 = vst.msk [vmem:[#allocation0 + $0x8] sm:$0x1] %vm83_vm12, %v82_v18   ;;  %vm190_vm12 = vcmask 859952  }
  0x86   :  { %v75_v17 = vpop.permute.xlu0 %74   ;;  %468 = vrot.lane.b32.xlu1 %v953_v16, %s1209_s12  ;;  %s1218_s12 = smov 51   ;;  %v985_v16 = vld [vmem:[%s1682_s0 + $0x34] sm:$0x1]  }
  0x87   :  { %78 = vst.msk [vmem:[#allocation0 + $0x10] sm:$0x1] %vm76_vm11, %v75_v17   ;;  %vm183_vm11 = vcmask 868152  }
  0x88   :  { %461 = vrot.lane.b32.xlu0 %v952_v15, %s1208_s11  ;;  %v95_v22 = vpop.permute.xlu1 %94   ;;  %v984_v15 = vld [vmem:[%s1682_s0 + $0x5f] sm:$0x1]   ;;  %s1257_s11 = smov 12  }
  0x89   :  { %98 = vst.msk [vmem:[#allocation0 + $0x10] sm:$0x1] %vm96_vm14, %v95_v22   ;;  %vm203_vm14 = vcmask 843552  }
  0x8a   :  { %v89_v21 = vpop.permute.xlu0 %88   ;;  %481 = vrot.lane.b32.xlu1 %v955_v20, %s1211_s18  ;;  %s1220_s18 = smov 49   ;;  %v987_v20 = vld [vmem:[%s1682_s0 + $0x5e] sm:$0x1]  }
  0x8b   :  { %91 = vst.msk [vmem:[#allocation0] sm:$0x1] %vm90_vm13, %v89_v21   ;;  %vm196_vm13 = vcmask 851752  }
  0x8c   :  { %474 = vrot.lane.b32.xlu0 %v954_v19, %s1210_s17  ;;  %v109_v26 = vpop.permute.xlu1 %108   ;;  %v986_v19 = vld [vmem:[%s1682_s0 + $0x9] sm:$0x1]   ;;  %s1259_s17 = smov 10  }
  0x8d   :  { %111 = vst.msk [vmem:[#allocation0] sm:$0x1] %vm110_vm0, %v109_v26   ;;  %vm216_vm0 = vcmask 827152  }
  0x8e   :  { %v102_v25 = vpop.permute.xlu0 %101   ;;  %494 = vrot.lane.b32.xlu1 %v957_v24, %s1213_s24  ;;  %s1222_s24 = smov 47   ;;  %v989_v24 = vld [vmem:[%s1682_s0 + $0x8] sm:$0x1]  }
  0x8f   :  { %105 = vst.msk [vmem:[#allocation0 + $0x8] sm:$0x1] %vm103_vm15, %v102_v25   ;;  %vm210_vm15 = vcmask 835352  }
  0x90   :  { %488 = vrot.lane.b32.xlu0 %v956_v23, %s1212_s23  ;;  %v122_v30 = vpop.permute.xlu1 %121   ;;  %v988_v23 = vld [vmem:[%s1682_s0 + $0x33] sm:$0x1]   ;;  %s1261_s23 = smov 8  }
  0x91   :  { %125 = vst.msk [vmem:[#allocation0 + $0x8] sm:$0x1] %vm123_vm2, %v122_v30   ;;  %vm230_vm2 = vcmask 810752  }
  0x92   :  { %v115_v29 = vpop.permute.xlu0 %114   ;;  %508 = vrot.lane.b32.xlu1 %v959_v28, %s1215_s30  ;;  %s1224_s30 = smov 45   ;;  %v991_v28 = vld [vmem:[%s1682_s0 + $0x32] sm:$0x1]  }
  0x93   :  { %118 = vst.msk [vmem:[#allocation0 + $0x10] sm:$0x1] %vm116_vm1, %v115_v29   ;;  %vm223_vm1 = vcmask 818952  }
  0x94   :  { %501 = vrot.lane.b32.xlu0 %v958_v27, %s1214_s29  ;;  %v135_v34 = vpop.permute.xlu1 %134   ;;  %v990_v27 = vld [vmem:[%s1682_s0 + $0x5d] sm:$0x1]   ;;  %s1263_s29 = smov 6  }
  0x95   :  { %138 = vst.msk [vmem:[#allocation0 + $0x10] sm:$0x1] %vm136_vm4, %v135_v34   ;;  %vm243_vm4 = vcmask 794352  }
  0x96   :  { %v129_v33 = vpop.permute.xlu0 %128   ;;  %521 = vrot.lane.b32.xlu1 %v961_v32, %s1217_s7  ;;  %s1226_s7 = smov 43   ;;  %v993_v32 = vld [vmem:[%s1682_s0 + $0x5c] sm:$0x1]  }
  0x97   :  { %131 = vst.msk [vmem:[#allocation0] sm:$0x1] %vm130_vm3, %v129_v33   ;;  %vm236_vm3 = vcmask 802552  }
  0x98   :  { %514 = vrot.lane.b32.xlu0 %v960_v31, %s1216_s6  ;;  %v149_v38 = vpop.permute.xlu1 %148   ;;  %v992_v31 = vld [vmem:[%s1682_s0 + $0x7] sm:$0x1]   ;;  %s1265_s6 = smov 4  }
  0x99   :  { %151 = vst.msk [vmem:[#allocation0] sm:$0x1] %vm150_vm6, %v149_v38   ;;  %vm256_vm6 = vcmask 777952  }
  0x9a   :  { %v142_v37 = vpop.permute.xlu0 %141   ;;  %534 = vrot.lane.b32.xlu1 %v963_v36, %s1219_s13  ;;  %s1228_s13 = smov 41   ;;  %v995_v36 = vld [vmem:[%s1682_s0 + $0x6] sm:$0x1]  }
  0x9b   :  { %145 = vst.msk [vmem:[#allocation0 + $0x8] sm:$0x1] %vm143_vm5, %v142_v37   ;;  %vm250_vm5 = vcmask 786152  }
  0x9c   :  { %528 = vrot.lane.b32.xlu0 %v962_v35, %s1218_s12  ;;  %v162_v42 = vpop.permute.xlu1 %161   ;;  %v994_v35 = vld [vmem:[%s1682_s0 + $0x31] sm:$0x1]   ;;  %s1267_s12 = smov 2  }
  0x9d   :  { %165 = vst.msk [vmem:[#allocation0 + $0x8] sm:$0x1] %vm163_vm8, %v162_v42   ;;  %vm270_vm8 = vcmask 761552  }
  0x9e   :  { %v155_v41 = vpop.permute.xlu0 %154   ;;  %548 = vrot.lane.b32.xlu1 %v965_v40, %s1221_s19  ;;  %s1230_s19 = smov 39   ;;  %v997_v40 = vld [vmem:[%s1682_s0 + $0x30] sm:$0x1]  }
  0x9f   :  { %158 = vst.msk [vmem:[#allocation0 + $0x10] sm:$0x1] %vm156_vm7, %v155_v41   ;;  %vm263_vm7 = vcmask 769752  }
  0xa0   :  { %541 = vrot.lane.b32.xlu0 %v964_v39, %s1220_s18  ;;  %v175_v46 = vpop.permute.xlu1 %174   ;;  %v996_v39 = vld [vmem:[%s1682_s0 + $0x5b] sm:$0x1]  }
  0xa1   :  { %178 = vst.msk [vmem:[#allocation0 + $0x10] sm:$0x1] %vm176_vm10, %v175_v46   ;;  %vm283_vm10 = vcmask 745152  }
  0xa2   :  { %v169_v45 = vpop.permute.xlu0 %168   ;;  %561 = vrot.lane.b32.xlu1 %v967_v44, %s1223_s25  ;;  %s1232_s25 = smov 37   ;;  %v999_v44 = vld [vmem:[%s1682_s0 + $0x5a] sm:$0x1]  }
  0xa3   :  { %171 = vst.msk [vmem:[#allocation0] sm:$0x1] %vm170_vm9, %v169_v45   ;;  %vm276_vm9 = vcmask 753352  }
  0xa4   :  { %554 = vrot.lane.b32.xlu0 %v966_v43, %s1222_s24  ;;  %v189_v50 = vpop.permute.xlu1 %188   ;;  %v998_v43 = vld [vmem:[%s1682_s0 + $0x5] sm:$0x1]  }
  0xa5   :  { %191 = vst.msk [vmem:[#allocation0] sm:$0x1] %vm190_vm12, %v189_v50   ;;  %vm296_vm12 = vcmask 728752  }
  0xa6   :  { %v182_v49 = vpop.permute.xlu0 %181   ;;  %574 = vrot.lane.b32.xlu1 %v969_v48, %s1225_s2  ;;  %s1234_s2 = smov 35   ;;  %v1001_v48 = vld [vmem:[%s1682_s0 + $0x4] sm:$0x1]  }
  0xa7   :  { %185 = vst.msk [vmem:[#allocation0 + $0x8] sm:$0x1] %vm183_vm11, %v182_v49   ;;  %vm290_vm11 = vcmask 736952  }
  0xa8   :  { %568 = vrot.lane.b32.xlu0 %v968_v47, %s1224_s30  ;;  %v202_v54 = vpop.permute.xlu1 %201   ;;  %v1000_v47 = vld [vmem:[%s1682_s0 + $0x2f] sm:$0x1]  }
  0xa9   :  { %205 = vst.msk [vmem:[#allocation0 + $0x8] sm:$0x1] %vm203_vm14, %v202_v54   ;;  %vm310_vm14 = vcmask 712352  }
  0xaa   :  { %v195_v53 = vpop.permute.xlu0 %194   ;;  %588 = vrot.lane.b32.xlu1 %v971_v52, %s1227_s8  ;;  %s1236_s8 = smov 33   ;;  %v1003_v52 = vld [vmem:[%s1682_s0 + $0x2e] sm:$0x1]  }
  0xab   :  { %198 = vst.msk [vmem:[#allocation0 + $0x10] sm:$0x1] %vm196_vm13, %v195_v53   ;;  %vm303_vm13 = vcmask 720552  }
  0xac   :  { %581 = vrot.lane.b32.xlu0 %v970_v51, %s1226_s7  ;;  %v215_v58 = vpop.permute.xlu1 %214   ;;  %v1002_v51 = vld [vmem:[%s1682_s0 + $0x59] sm:$0x1]  }
  0xad   :  { %218 = vst.msk [vmem:[#allocation0 + $0x10] sm:$0x1] %vm216_vm0, %v215_v58   ;;  %vm323_vm0 = vcmask 695952  }
  0xae   :  { %v209_v57 = vpop.permute.xlu0 %208   ;;  %601 = vrot.lane.b32.xlu1 %v973_v56, %s1229_s14  ;;  %s1238_s14 = smov 31   ;;  %v1005_v56 = vld [vmem:[%s1682_s0 + $0x58] sm:$0x1]  }
  0xaf   :  { %211 = vst.msk [vmem:[#allocation0] sm:$0x1] %vm210_vm15, %v209_v57   ;;  %vm316_vm15 = vcmask 704152  }
  0xb0   :  { %594 = vrot.lane.b32.xlu0 %v972_v55, %s1228_s13  ;;  %v229_v62 = vpop.permute.xlu1 %228   ;;  %v1004_v55 = vld [vmem:[%s1682_s0 + $0x3] sm:$0x1]  }
  0xb1   :  { %231 = vst.msk [vmem:[#allocation0] sm:$0x1] %vm230_vm2, %v229_v62   ;;  %vm336_vm2 = vcmask 679552  }
  0xb2   :  { %v222_v61 = vpop.permute.xlu0 %221   ;;  %614 = vrot.lane.b32.xlu1 %v975_v60, %s1231_s20  ;;  %s1240_s20 = smov 29   ;;  %v1007_v60 = vld [vmem:[%s1682_s0 + $0x2] sm:$0x1]  }
  0xb3   :  { %225 = vst.msk [vmem:[#allocation0 + $0x8] sm:$0x1] %vm223_vm1, %v222_v61   ;;  %vm330_vm1 = vcmask 687752  }
  0xb4   :  { %608 = vrot.lane.b32.xlu0 %v974_v59, %s1230_s19  ;;  %v242_v2 = vpop.permute.xlu1 %241   ;;  %v1006_v59 = vld [vmem:[%s1682_s0 + $0x2d] sm:$0x1]  }
  0xb5   :  { %245 = vst.msk [vmem:[#allocation0 + $0x8] sm:$0x1] %vm243_vm4, %v242_v2   ;;  %vm350_vm4 = vcmask 663152  }
  0xb6   :  { %v235_v1 = vpop.permute.xlu0 %234   ;;  %628 = vrot.lane.b32.xlu1 %v977_v0, %s1233_s26  ;;  %s1242_s26 = smov 27   ;;  %v1009_v0 = vld [vmem:[%s1682_s0 + $0x2c] sm:$0x1]  }
  0xb7   :  { %238 = vst.msk [vmem:[#allocation0 + $0x10] sm:$0x1] %vm236_vm3, %v235_v1   ;;  %vm343_vm3 = vcmask 671352  }
  0xb8   :  { %621 = vrot.lane.b32.xlu0 %v976_v63, %s1232_s25  ;;  %v255_v6 = vpop.permute.xlu1 %254   ;;  %v1008_v63 = vld [vmem:[%s1682_s0 + $0x57] sm:$0x1]  }
  0xb9   :  { %258 = vst.msk [vmem:[#allocation0 + $0x10] sm:$0x1] %vm256_vm6, %v255_v6   ;;  %vm363_vm6 = vcmask 646752  }
  0xba   :  { %v249_v5 = vpop.permute.xlu0 %248   ;;  %641 = vrot.lane.b32.xlu1 %v979_v4, %s1235_s3  ;;  %s1244_s3 = smov 25   ;;  %v1011_v4 = vld [vmem:[%s1682_s0 + $0x56] sm:$0x1]  }
  0xbb   :  { %251 = vst.msk [vmem:[#allocation0] sm:$0x1] %vm250_vm5, %v249_v5   ;;  %vm356_vm5 = vcmask 654952  }
  0xbc   :  { %634 = vrot.lane.b32.xlu0 %v978_v3, %s1234_s2  ;;  %v269_v10 = vpop.permute.xlu1 %268   ;;  %v1010_v3 = vld [vmem:[%s1682_s0 + $0x1] sm:$0x1]  }
  0xbd   :  { %271 = vst.msk [vmem:[#allocation0] sm:$0x1] %vm270_vm8, %v269_v10   ;;  %vm376_vm8 = vcmask 630352  }
  0xbe   :  { %v262_v9 = vpop.permute.xlu0 %261   ;;  %654 = vrot.lane.b32.xlu1 %v981_v8, %s1237_s9  ;;  %s1246_s9 = smov 23  }
  0xbf   :  { %265 = vst.msk [vmem:[#allocation0 + $0x8] sm:$0x1] %vm263_vm7, %v262_v9   ;;  %vm370_vm7 = vcmask 638552  }
  0xc0   :  { %648 = vrot.lane.b32.xlu0 %v980_v7, %s1236_s8  ;;  %v282_v14 = vpop.permute.xlu1 %281   ;;  %v1012_v7 = vld [vmem:[%s1682_s0 + $0x2b] sm:$0x1]   ;;  %s1268_s0 = smov 1  }
  0xc1   :  { %285 = vst.msk [vmem:[#allocation0 + $0x8] sm:$0x1] %vm283_vm10, %v282_v14   ;;  %vm390_vm10 = vcmask 613952  }
  0xc2   :  { %v275_v13 = vpop.permute.xlu0 %274   ;;  %668 = vrot.lane.b32.xlu1 %v983_v12, %s1239_s15  ;;  %s1248_s15 = smov 21  }
  0xc3   :  { %278 = vst.msk [vmem:[#allocation0 + $0x10] sm:$0x1] %vm276_vm9, %v275_v13   ;;  %vm383_vm9 = vcmask 622152  }
  0xc4   :  { %661 = vrot.lane.b32.xlu0 %v982_v11, %s1238_s14  ;;  %v295_v18 = vpop.permute.xlu1 %294  }
  0xc5   :  { %298 = vst.msk [vmem:[#allocation0 + $0x10] sm:$0x1] %vm296_vm12, %v295_v18   ;;  %vm403_vm12 = vcmask 597552  }
  0xc6   :  { %v289_v17 = vpop.permute.xlu0 %288   ;;  %681 = vrot.lane.b32.xlu1 %v985_v16, %s1241_s21  ;;  %s1250_s21 = smov 19  }
  0xc7   :  { %291 = vst.msk [vmem:[#allocation0] sm:$0x1] %vm290_vm11, %v289_v17   ;;  %vm396_vm11 = vcmask 605752  }
  0xc8   :  { %674 = vrot.lane.b32.xlu0 %v984_v15, %s1240_s20  ;;  %v309_v22 = vpop.permute.xlu1 %308  }
  0xc9   :  { %311 = vst.msk [vmem:[#allocation0] sm:$0x1] %vm310_vm14, %v309_v22   ;;  %vm416_vm14 = vcmask 581152  }
  0xca   :  { %v302_v21 = vpop.permute.xlu0 %301   ;;  %694 = vrot.lane.b32.xlu1 %v987_v20, %s1243_s27  ;;  %s1252_s27 = smov 17  }
  0xcb   :  { %305 = vst.msk [vmem:[#allocation0 + $0x8] sm:$0x1] %vm303_vm13, %v302_v21   ;;  %vm410_vm13 = vcmask 589352  }
  0xcc   :  { %688 = vrot.lane.b32.xlu0 %v986_v19, %s1242_s26  ;;  %v322_v26 = vpop.permute.xlu1 %321  }
  0xcd   :  { %325 = vst.msk [vmem:[#allocation0 + $0x8] sm:$0x1] %vm323_vm0, %v322_v26   ;;  %vm430_vm0 = vcmask 564752  }
  0xce   :  { %v315_v25 = vpop.permute.xlu0 %314   ;;  %708 = vrot.lane.b32.xlu1 %v989_v24, %s1245_s4  ;;  %s1254_s4 = smov 15  }
  0xcf   :  { %318 = vst.msk [vmem:[#allocation0 + $0x10] sm:$0x1] %vm316_vm15, %v315_v25   ;;  %vm423_vm15 = vcmask 572952  }
  0xd0   :  { %701 = vrot.lane.b32.xlu0 %v988_v23, %s1244_s3  ;;  %v335_v30 = vpop.permute.xlu1 %334  }
  0xd1   :  { %338 = vst.msk [vmem:[#allocation0 + $0x10] sm:$0x1] %vm336_vm2, %v335_v30   ;;  %vm443_vm2 = vcmask 548352  }
  0xd2   :  { %v329_v29 = vpop.permute.xlu0 %328   ;;  %721 = vrot.lane.b32.xlu1 %v991_v28, %s1247_s10  ;;  %s1256_s10 = smov 13  }
  0xd3   :  { %331 = vst.msk [vmem:[#allocation0] sm:$0x1] %vm330_vm1, %v329_v29   ;;  %vm436_vm1 = vcmask 556552  }
  0xd4   :  { %714 = vrot.lane.b32.xlu0 %v990_v27, %s1246_s9  ;;  %v349_v34 = vpop.permute.xlu1 %348  }
  0xd5   :  { %351 = vst.msk [vmem:[#allocation0] sm:$0x1] %vm350_vm4, %v349_v34   ;;  %vm456_vm4 = vcmask 531952  }
  0xd6   :  { %v342_v33 = vpop.permute.xlu0 %341   ;;  %734 = vrot.lane.b32.xlu1 %v993_v32, %s1249_s16  ;;  %s1258_s16 = smov 11  }
  0xd7   :  { %345 = vst.msk [vmem:[#allocation0 + $0x8] sm:$0x1] %vm343_vm3, %v342_v33   ;;  %vm450_vm3 = vcmask 540152  }
  0xd8   :  { %728 = vrot.lane.b32.xlu0 %v992_v31, %s1248_s15  ;;  %v362_v38 = vpop.permute.xlu1 %361  }
  0xd9   :  { %365 = vst.msk [vmem:[#allocation0 + $0x8] sm:$0x1] %vm363_vm6, %v362_v38   ;;  %vm470_vm6 = vcmask 515552  }
  0xda   :  { %v355_v37 = vpop.permute.xlu0 %354   ;;  %748 = vrot.lane.b32.xlu1 %v995_v36, %s1251_s22  ;;  %s1260_s22 = smov 9  }
  0xdb   :  { %358 = vst.msk [vmem:[#allocation0 + $0x10] sm:$0x1] %vm356_vm5, %v355_v37   ;;  %vm463_vm5 = vcmask 523752  }
  0xdc   :  { %741 = vrot.lane.b32.xlu0 %v994_v35, %s1250_s21  ;;  %v375_v42 = vpop.permute.xlu1 %374  }
  0xdd   :  { %378 = vst.msk [vmem:[#allocation0 + $0x10] sm:$0x1] %vm376_vm8, %v375_v42   ;;  %vm483_vm8 = vcmask 499152  }
  0xde   :  { %v369_v41 = vpop.permute.xlu0 %368   ;;  %761 = vrot.lane.b32.xlu1 %v997_v40, %s1253_s28  ;;  %s1262_s28 = smov 7  }
  0xdf   :  { %371 = vst.msk [vmem:[#allocation0] sm:$0x1] %vm370_vm7, %v369_v41   ;;  %vm476_vm7 = vcmask 507352  }
  0xe0   :  { %754 = vrot.lane.b32.xlu0 %v996_v39, %s1252_s27  ;;  %v389_v46 = vpop.permute.xlu1 %388  }
  0xe1   :  { %391 = vst.msk [vmem:[#allocation0] sm:$0x1] %vm390_vm10, %v389_v46   ;;  %vm496_vm10 = vcmask 482752  }
  0xe2   :  { %v382_v45 = vpop.permute.xlu0 %381   ;;  %774 = vrot.lane.b32.xlu1 %v999_v44, %s1255_s5  ;;  %s1264_s5 = smov 5  }
  0xe3   :  { %385 = vst.msk [vmem:[#allocation0 + $0x8] sm:$0x1] %vm383_vm9, %v382_v45   ;;  %vm490_vm9 = vcmask 490952  }
  0xe4   :  { %768 = vrot.lane.b32.xlu0 %v998_v43, %s1254_s4  ;;  %v402_v50 = vpop.permute.xlu1 %401  }
  0xe5   :  { %405 = vst.msk [vmem:[#allocation0 + $0x8] sm:$0x1] %vm403_vm12, %v402_v50   ;;  %vm510_vm12 = vcmask 466352  }
  0xe6   :  { %v395_v49 = vpop.permute.xlu0 %394   ;;  %788 = vrot.lane.b32.xlu1 %v1001_v48, %s1257_s11  ;;  %s1266_s11 = smov 3  }
  0xe7   :  { %398 = vst.msk [vmem:[#allocation0 + $0x10] sm:$0x1] %vm396_vm11, %v395_v49   ;;  %vm503_vm11 = vcmask 474552  }
  0xe8   :  { %781 = vrot.lane.b32.xlu0 %v1000_v47, %s1256_s10  ;;  %v415_v54 = vpop.permute.xlu1 %414  }
  0xe9   :  { %418 = vst.msk [vmem:[#allocation0 + $0x10] sm:$0x1] %vm416_vm14, %v415_v54   ;;  %vm523_vm14 = vcmask 449952  }
  0xea   :  { %v409_v53 = vpop.permute.xlu0 %408   ;;  %801 = vrot.lane.b32.xlu1 %v1003_v52, %s1259_s17 }
  0xeb   :  { %411 = vst.msk [vmem:[#allocation0] sm:$0x1] %vm410_vm13, %v409_v53   ;;  %vm516_vm13 = vcmask 458152  }
  0xec   :  { %794 = vrot.lane.b32.xlu0 %v1002_v51, %s1258_s16  ;;  %v429_v58 = vpop.permute.xlu1 %428  }
  0xed   :  { %431 = vst.msk [vmem:[#allocation0] sm:$0x1] %vm430_vm0, %v429_v58   ;;  %vm536_vm0 = vcmask 433552  }
  0xee   :  { %v422_v57 = vpop.permute.xlu0 %421   ;;  %814 = vrot.lane.b32.xlu1 %v1005_v56, %s1261_s23 }
  0xef   :  { %425 = vst.msk [vmem:[#allocation0 + $0x8] sm:$0x1] %vm423_vm15, %v422_v57   ;;  %vm530_vm15 = vcmask 441752  }
  0xf0   :  { %808 = vrot.lane.b32.xlu0 %v1004_v55, %s1260_s22  ;;  %v442_v62 = vpop.permute.xlu1 %441  }
  0xf1   :  { %445 = vst.msk [vmem:[#allocation0 + $0x8] sm:$0x1] %vm443_vm2, %v442_v62   ;;  %vm550_vm2 = vcmask 417152  }
  0xf2   :  { %v435_v61 = vpop.permute.xlu0 %434   ;;  %828 = vrot.lane.b32.xlu1 %v1007_v60, %s1263_s29 }
  0xf3   :  { %438 = vst.msk [vmem:[#allocation0 + $0x10] sm:$0x1] %vm436_vm1, %v435_v61   ;;  %vm543_vm1 = vcmask 425352  }
  0xf4   :  { %821 = vrot.lane.b32.xlu0 %v1006_v59, %s1262_s28  ;;  %v455_v2 = vpop.permute.xlu1 %454  }
  0xf5   :  { %458 = vst.msk [vmem:[#allocation0 + $0x10] sm:$0x1] %vm456_vm4, %v455_v2   ;;  %vm563_vm4 = vcmask 400752  }
  0xf6   :  { %v449_v1 = vpop.permute.xlu0 %448   ;;  %841 = vrot.lane.b32.xlu1 %v1009_v0, %s1265_s6 }
  0xf7   :  { %451 = vst.msk [vmem:[#allocation0] sm:$0x1] %vm450_vm3, %v449_v1   ;;  %vm556_vm3 = vcmask 408952  }
  0xf8   :  { %834 = vrot.lane.b32.xlu0 %v1008_v63, %s1264_s5  ;;  %v469_v6 = vpop.permute.xlu1 %468  }
  0xf9   :  { %471 = vst.msk [vmem:[#allocation0] sm:$0x1] %vm470_vm6, %v469_v6   ;;  %vm576_vm6 = vcmask 384352  }
  0xfa   :  { %v462_v5 = vpop.permute.xlu0 %461   ;;  %854 = vrot.lane.b32.xlu1 %v1011_v4, %s1267_s12 }
  0xfb   :  { %465 = vst.msk [vmem:[#allocation0 + $0x8] sm:$0x1] %vm463_vm5, %v462_v5   ;;  %vm570_vm5 = vcmask 392552  }
  0xfc   :  { %848 = vrot.lane.b32.xlu0 %v1010_v3, %s1266_s11  ;;  %v482_v9 = vpop.permute.xlu1 %481  }
  0xfd   :  { %485 = vst.msk [vmem:[#allocation0 + $0x8] sm:$0x1] %vm483_vm8, %v482_v9   ;;  %vm590_vm8 = vcmask 367952  }
  0xfe   :  { %v475_v8 = vpop.permute.xlu0 %474  }
  0xff   :  { %478 = vst.msk [vmem:[#allocation0 + $0x10] sm:$0x1] %vm476_vm7, %v475_v8   ;;  %vm583_vm7 = vcmask 376152  }
 0x100   :  { %861 = vrot.lane.b32.xlu0 %v1012_v7, %s1268_s0  ;;  %v495_v11 = vpop.permute.xlu1 %494  }
 0x101   :  { %498 = vst.msk [vmem:[#allocation0 + $0x10] sm:$0x1] %vm496_vm10, %v495_v11   ;;  %vm603_vm10 = vcmask 351552  }
 0x102   :  { %v489_v10 = vpop.permute.xlu0 %488  }
 0x103   :  { %491 = vst.msk [vmem:[#allocation0] sm:$0x1] %vm490_vm9, %v489_v10   ;;  %vm596_vm9 = vcmask 359752  }
 0x104   :  { %v509_v13 = vpop.permute.xlu1 %508  }
 0x105   :  { %511 = vst.msk [vmem:[#allocation0] sm:$0x1] %vm510_vm12, %v509_v13   ;;  %vm616_vm12 = vcmask 335152  }
 0x106   :  { %v502_v12 = vpop.permute.xlu0 %501  }
 0x107   :  { %505 = vst.msk [vmem:[#allocation0 + $0x8] sm:$0x1] %vm503_vm11, %v502_v12   ;;  %vm610_vm11 = vcmask 343352  }
 0x108   :  { %v522_v15 = vpop.permute.xlu1 %521  }
 0x109   :  { %525 = vst.msk [vmem:[#allocation0 + $0x8] sm:$0x1] %vm523_vm14, %v522_v15   ;;  %vm630_vm14 = vcmask 318752  }
 0x10a   :  { %v515_v14 = vpop.permute.xlu0 %514  }
 0x10b   :  { %518 = vst.msk [vmem:[#allocation0 + $0x10] sm:$0x1] %vm516_vm13, %v515_v14   ;;  %vm623_vm13 = vcmask 326952  }
 0x10c   :  { %v535_v17 = vpop.permute.xlu1 %534  }
 0x10d   :  { %538 = vst.msk [vmem:[#allocation0 + $0x10] sm:$0x1] %vm536_vm0, %v535_v17   ;;  %vm643_vm0 = vcmask 302352  }
 0x10e   :  { %v529_v16 = vpop.permute.xlu0 %528  }
 0x10f   :  { %531 = vst.msk [vmem:[#allocation0] sm:$0x1] %vm530_vm15, %v529_v16   ;;  %vm636_vm15 = vcmask 310552  }
 0x110   :  { %v549_v19 = vpop.permute.xlu1 %548  }
 0x111   :  { %551 = vst.msk [vmem:[#allocation0] sm:$0x1] %vm550_vm2, %v549_v19   ;;  %vm656_vm2 = vcmask 285952  }
 0x112   :  { %v542_v18 = vpop.permute.xlu0 %541  }
 0x113   :  { %545 = vst.msk [vmem:[#allocation0 + $0x8] sm:$0x1] %vm543_vm1, %v542_v18   ;;  %vm650_vm1 = vcmask 294152  }
 0x114   :  { %v562_v21 = vpop.permute.xlu1 %561  }
 0x115   :  { %565 = vst.msk [vmem:[#allocation0 + $0x8] sm:$0x1] %vm563_vm4, %v562_v21   ;;  %vm670_vm4 = vcmask 269552  }
 0x116   :  { %v555_v20 = vpop.permute.xlu0 %554  }
 0x117   :  { %558 = vst.msk [vmem:[#allocation0 + $0x10] sm:$0x1] %vm556_vm3, %v555_v20   ;;  %vm663_vm3 = vcmask 277752  }
 0x118   :  { %v575_v23 = vpop.permute.xlu1 %574  }
 0x119   :  { %578 = vst.msk [vmem:[#allocation0 + $0x10] sm:$0x1] %vm576_vm6, %v575_v23   ;;  %vm683_vm6 = vcmask 253152  }
 0x11a   :  { %v569_v22 = vpop.permute.xlu0 %568  }
 0x11b   :  { %571 = vst.msk [vmem:[#allocation0] sm:$0x1] %vm570_vm5, %v569_v22   ;;  %vm676_vm5 = vcmask 261352  }
 0x11c   :  { %v589_v25 = vpop.permute.xlu1 %588  }
 0x11d   :  { %591 = vst.msk [vmem:[#allocation0] sm:$0x1] %vm590_vm8, %v589_v25   ;;  %vm696_vm8 = vcmask 236752  }
 0x11e   :  { %v582_v24 = vpop.permute.xlu0 %581  }
 0x11f   :  { %585 = vst.msk [vmem:[#allocation0 + $0x8] sm:$0x1] %vm583_vm7, %v582_v24   ;;  %vm690_vm7 = vcmask 244952  }
 0x120   :  { %v602_v27 = vpop.permute.xlu1 %601  }
 0x121   :  { %605 = vst.msk [vmem:[#allocation0 + $0x8] sm:$0x1] %vm603_vm10, %v602_v27   ;;  %vm710_vm10 = vcmask 220352  }
 0x122   :  { %v595_v26 = vpop.permute.xlu0 %594  }
 0x123   :  { %598 = vst.msk [vmem:[#allocation0 + $0x10] sm:$0x1] %vm596_vm9, %v595_v26   ;;  %vm703_vm9 = vcmask 228552  }
 0x124   :  { %v615_v29 = vpop.permute.xlu1 %614  }
 0x125   :  { %618 = vst.msk [vmem:[#allocation0 + $0x10] sm:$0x1] %vm616_vm12, %v615_v29   ;;  %vm723_vm12 = vcmask 203952  }
 0x126   :  { %v609_v28 = vpop.permute.xlu0 %608  }
 0x127   :  { %611 = vst.msk [vmem:[#allocation0] sm:$0x1] %vm610_vm11, %v609_v28   ;;  %vm716_vm11 = vcmask 212152  }
 0x128   :  { %v629_v31 = vpop.permute.xlu1 %628  }
 0x129   :  { %631 = vst.msk [vmem:[#allocation0] sm:$0x1] %vm630_vm14, %v629_v31   ;;  %vm736_vm14 = vcmask 187552  }
 0x12a   :  { %v622_v30 = vpop.permute.xlu0 %621  }
 0x12b   :  { %625 = vst.msk [vmem:[#allocation0 + $0x8] sm:$0x1] %vm623_vm13, %v622_v30   ;;  %vm730_vm13 = vcmask 195752  }
 0x12c   :  { %v642_v33 = vpop.permute.xlu1 %641  }
 0x12d   :  { %645 = vst.msk [vmem:[#allocation0 + $0x8] sm:$0x1] %vm643_vm0, %v642_v33   ;;  %vm750_vm0 = vcmask 171152  }
 0x12e   :  { %v635_v32 = vpop.permute.xlu0 %634  }
 0x12f   :  { %638 = vst.msk [vmem:[#allocation0 + $0x10] sm:$0x1] %vm636_vm15, %v635_v32   ;;  %vm743_vm15 = vcmask 179352  }
 0x130   :  { %v655_v35 = vpop.permute.xlu1 %654  }
 0x131   :  { %658 = vst.msk [vmem:[#allocation0 + $0x10] sm:$0x1] %vm656_vm2, %v655_v35   ;;  %vm763_vm2 = vcmask 154752  }
 0x132   :  { %v649_v34 = vpop.permute.xlu0 %648  }
 0x133   :  { %651 = vst.msk [vmem:[#allocation0] sm:$0x1] %vm650_vm1, %v649_v34   ;;  %vm756_vm1 = vcmask 162952  }
 0x134   :  { %v669_v37 = vpop.permute.xlu1 %668  }
 0x135   :  { %671 = vst.msk [vmem:[#allocation0] sm:$0x1] %vm670_vm4, %v669_v37   ;;  %vm776_vm4 = vcmask 138352  }
 0x136   :  { %v662_v36 = vpop.permute.xlu0 %661  }
 0x137   :  { %665 = vst.msk [vmem:[#allocation0 + $0x8] sm:$0x1] %vm663_vm3, %v662_v36   ;;  %vm770_vm3 = vcmask 146552  }
 0x138   :  { %v682_v39 = vpop.permute.xlu1 %681  }
 0x139   :  { %685 = vst.msk [vmem:[#allocation0 + $0x8] sm:$0x1] %vm683_vm6, %v682_v39   ;;  %vm790_vm6 = vcmask 121952  }
 0x13a   :  { %v675_v38 = vpop.permute.xlu0 %674  }
 0x13b   :  { %678 = vst.msk [vmem:[#allocation0 + $0x10] sm:$0x1] %vm676_vm5, %v675_v38   ;;  %vm783_vm5 = vcmask 130152  }
 0x13c   :  { %v695_v41 = vpop.permute.xlu1 %694  }
 0x13d   :  { %698 = vst.msk [vmem:[#allocation0 + $0x10] sm:$0x1] %vm696_vm8, %v695_v41   ;;  %vm803_vm8 = vcmask 105552  }
 0x13e   :  { %v689_v40 = vpop.permute.xlu0 %688  }
 0x13f   :  { %691 = vst.msk [vmem:[#allocation0] sm:$0x1] %vm690_vm7, %v689_v40   ;;  %vm796_vm7 = vcmask 113752  }
 0x140   :  { %v709_v43 = vpop.permute.xlu1 %708  }
 0x141   :  { %711 = vst.msk [vmem:[#allocation0] sm:$0x1] %vm710_vm10, %v709_v43   ;;  %vm816_vm10 = vcmask 89152  }
 0x142   :  { %v702_v42 = vpop.permute.xlu0 %701  }
 0x143   :  { %705 = vst.msk [vmem:[#allocation0 + $0x8] sm:$0x1] %vm703_vm9, %v702_v42   ;;  %vm810_vm9 = vcmask 97352  }
 0x144   :  { %v722_v45 = vpop.permute.xlu1 %721  }
 0x145   :  { %725 = vst.msk [vmem:[#allocation0 + $0x8] sm:$0x1] %vm723_vm12, %v722_v45   ;;  %vm830_vm12 = vcmask 72752  }
 0x146   :  { %v715_v44 = vpop.permute.xlu0 %714  }
 0x147   :  { %718 = vst.msk [vmem:[#allocation0 + $0x10] sm:$0x1] %vm716_vm11, %v715_v44   ;;  %vm823_vm11 = vcmask 80952  }
 0x148   :  { %v735_v47 = vpop.permute.xlu1 %734  }
 0x149   :  { %738 = vst.msk [vmem:[#allocation0 + $0x10] sm:$0x1] %vm736_vm14, %v735_v47   ;;  %vm843_vm14 = vcmask 56352  }
 0x14a   :  { %v729_v46 = vpop.permute.xlu0 %728  }
 0x14b   :  { %731 = vst.msk [vmem:[#allocation0] sm:$0x1] %vm730_vm13, %v729_v46   ;;  %vm836_vm13 = vcmask 64552  }
 0x14c   :  { %v749_v49 = vpop.permute.xlu1 %748  }
 0x14d   :  { %751 = vst.msk [vmem:[#allocation0] sm:$0x1] %vm750_vm0, %v749_v49   ;;  %vm856_vm0 = vcmask 39952  }
 0x14e   :  { %v742_v48 = vpop.permute.xlu0 %741  }
 0x14f   :  { %745 = vst.msk [vmem:[#allocation0 + $0x8] sm:$0x1] %vm743_vm15, %v742_v48   ;;  %vm850_vm15 = vcmask 48152  }
 0x150   :  { %v762_v51 = vpop.permute.xlu1 %761  }
 0x151   :  { %765 = vst.msk [vmem:[#allocation0 + $0x8] sm:$0x1] %vm763_vm2, %v762_v51  }
 0x152   :  { %v755_v50 = vpop.permute.xlu0 %754  }
 0x153   :  { %758 = vst.msk [vmem:[#allocation0 + $0x10] sm:$0x1] %vm756_vm1, %v755_v50   ;;  %vm863_vm1 = vcmask 31752  }
 0x154   :  { %v775_v53 = vpop.permute.xlu1 %774  }
 0x155   :  { %778 = vst.msk [vmem:[#allocation0 + $0x10] sm:$0x1] %vm776_vm4, %v775_v53  }
 0x156   :  { %v769_v52 = vpop.permute.xlu0 %768  }
 0x157   :  { %771 = vst.msk [vmem:[#allocation0] sm:$0x1] %vm770_vm3, %v769_v52  }
 0x158   :  { %v789_v55 = vpop.permute.xlu1 %788  }
 0x159   :  { %791 = vst.msk [vmem:[#allocation0] sm:$0x1] %vm790_vm6, %v789_v55  }
 0x15a   :  { %v782_v54 = vpop.permute.xlu0 %781  }
 0x15b   :  { %785 = vst.msk [vmem:[#allocation0 + $0x8] sm:$0x1] %vm783_vm5, %v782_v54  }
 0x15c   :  { %v802_v57 = vpop.permute.xlu1 %801  }
 0x15d   :  { %805 = vst.msk [vmem:[#allocation0 + $0x8] sm:$0x1] %vm803_vm8, %v802_v57  }
 0x15e   :  { %v795_v56 = vpop.permute.xlu0 %794  }
 0x15f   :  { %798 = vst.msk [vmem:[#allocation0 + $0x10] sm:$0x1] %vm796_vm7, %v795_v56  }
 0x160   :  { %v815_v59 = vpop.permute.xlu1 %814  }
 0x161   :  { %818 = vst.msk [vmem:[#allocation0 + $0x10] sm:$0x1] %vm816_vm10, %v815_v59  }
 0x162   :  { %v809_v58 = vpop.permute.xlu0 %808  }
 0x163   :  { %811 = vst.msk [vmem:[#allocation0] sm:$0x1] %vm810_vm9, %v809_v58  }
 0x164   :  { %v829_v61 = vpop.permute.xlu1 %828  }
 0x165   :  { %831 = vst.msk [vmem:[#allocation0] sm:$0x1] %vm830_vm12, %v829_v61  }
 0x166   :  { %v822_v60 = vpop.permute.xlu0 %821  }
 0x167   :  { %825 = vst.msk [vmem:[#allocation0 + $0x8] sm:$0x1] %vm823_vm11, %v822_v60  }
 0x168   :  { %v842_v63 = vpop.permute.xlu1 %841  }
 0x169   :  { %845 = vst.msk [vmem:[#allocation0 + $0x8] sm:$0x1] %vm843_vm14, %v842_v63  }
 0x16a   :  { %v835_v62 = vpop.permute.xlu0 %834  }
 0x16b   :  { %838 = vst.msk [vmem:[#allocation0 + $0x10] sm:$0x1] %vm836_vm13, %v835_v62  }
 0x16c   :  { %v855_v1 = vpop.permute.xlu1 %854  }
 0x16d   :  { %858 = vst.msk [vmem:[#allocation0 + $0x10] sm:$0x1] %vm856_vm0, %v855_v1  }
 0x16e   :  { %v849_v0 = vpop.permute.xlu0 %848  }
 0x16f   :  { %851 = vst.msk [vmem:[#allocation0] sm:$0x1] %vm850_vm15, %v849_v0  }
 0x172   :  { %v862_v2 = vpop.permute.xlu0 %861  }
 0x173   :  { %865 = vst.msk [vmem:[#allocation0 + $0x8] sm:$0x1] %vm863_vm1, %v862_v2  }
 0x174   :  { %v878_v4 = vld [vmem:[#allocation0 + $0x10] sm:$0x1] }
 0x175   :  { %1014 = vst [vmem:[%s1683_s1 + $0x2] sm:$0x1] %v878_v4 }
 0x176   :  { %v869_v3 = vld [vmem:[#allocation0] sm:$0x1] }
 0x177   :  { %871 = vst [vmem:[%s1683_s1] sm:$0x1] %v869_v3 }
 0x17a   :  { %v873_v5 = vld [vmem:[#allocation0 + $0x8] sm:$0x1] }
 0x17b   :  { %1013 = vst [vmem:[%s1683_s1 + $0x1] sm:$0x1] %v873_v5 }

// kernel: restricted_loss.1
= control target key start
LH: loop header
LB: loop body
LE: loop exit
PB: predicated region body
PF: predicated region fallthrough
CT: control target
= control target key end

     0   :  { %v26_v0 = vlaneseq  ;;  %s176_s0 = inlined_call_operand.vmem [shape: f32[3,384], index: 0, kind: input, shape index: {}]   ;;  %s177_s1 = inlined_call_operand.vmem [shape: f32[3,384], index: 1, kind: input, shape index: {}]   ;;  %s178_s2 = inlined_call_operand.vmem [shape: f32[3,384], index: 2, kind: input, shape index: {}]   ;;  %s179_s3 = inlined_call_operand.vmem [shape: f32[1,384], index: 3, kind: input, shape index: {}]   ;;  %s180_s4 = inlined_call_operand.hbm [shape: f32[1,1,1], index: 4, kind: output, shape index: {}]  }
   0x2   :  { %v27_v1 = vshrl.u32 %v26_v0, 7 }
   0x3   :  { %9 = vsyncpa [#allocation3], 0  ;;  %v24_v2 = vld [vmem:[%s179_s3] sm:$0x7]  ;;  %v21_v6 = vld [vmem:[%s177_s1 + $0x8] sm:$0x7] }
   0x4   :  { %v28_v3 = vsub.s32 0, %v27_v1  ;;  %v32_v4 = vsub.s32 1, %v27_v1  ;;  %v36_v5 = vsub.s32 2, %v27_v1  ;;  %v19_v10 = vld [vmem:[%s176_s0 + $0x8] sm:$0x7]  ;;  %vm58_vm0 = vcmask 1042432  }
   0x5   :  { %v20_v11 = vld [vmem:[%s177_s1] sm:$0x77]  ;;  %v23_v12 = vld [vmem:[%s178_s2 + $0x8] sm:$0x7]  ;;  %vm74_vm1 = vcmask 0  }
   0x6   :  { %v29_v7 = vrot.slane %v24_v2, %v28_v3  ;;  %v33_v8 = vrot.slane %v24_v2, %v32_v4  ;;  %v37_v9 = vrot.slane %v24_v2, %v36_v5  ;;  %v18_v15 = vld [vmem:[%s176_s0] sm:$0x77]  ;;  %s117_s0 = smov [#allocation2]  }
   0x7   :  { %v22_v16 = vld [vmem:[%s178_s2] sm:$0x77]  ;;  %s82_s1 = sshll.u32 %s117_s0, 4  ;;  %s83_s1 = int_to_ptr.vmem [resolvable:$true] %s82_s1 }
   0x8   :  { %v39_v13 = vcombine.low %v29_v7, %v33_v8  ;;  %v42_v14 = vmul.f32 %v37_v9, %v21_v6  ;;  %s93_s28 = scalar_lea.vmem %s83_s1, 16  ;;  %s97_s29 = scalar_lea.vmem %s83_s1, 32 }
   0x9   :  { %p94_p0 = scmp.ne.s32.totalorder %s83_s1, %s93_s28  ;;  %p98_p1 = scmp.lt.s32.totalorder %s83_s1, %s83_s1 }
   0xa   :  { %v41_v17 = vmul.f32 %v39_v13, %v20_v11  ;;  %v44_v18 = vsub.f32 %v19_v10, %v42_v14  ;;  %v46_v19 = vsub.f32 %v23_v12, %v42_v14  ;;  %p99_p2 = scmp.lt.s32.totalorder %s97_s29, %s93_s28 }
   0xc   :  { %v43_v20 = vsub.f32 %v18_v15, %v41_v17  ;;  %v45_v21 = vsub.f32 %v22_v16, %v41_v17  ;;  %v50_v22 = vmul.f32 %v46_v19, %v46_v19  ;;  %v48_v24 = vmul.f32 %v44_v18, %v44_v18  ;;  %p100_p3 = por %p99_p2, %p98_p1 }
   0xe   :  { %v47_v23 = vmul.f32 %v43_v20, %v43_v20  ;;  %v49_v25 = vmul.f32 %v45_v21, %v45_v21  ;;  %v52_v26 = vmul.f32 0.1, %v50_v22  ;;  %p101_p4 = pnand %p100_p3, %p94_p0 }
  0x10   :  { %v51_v27 = vmul.f32 0.1, %v49_v25  ;;  %v54_v29 = vadd.f32 %v52_v26, %v48_v24 }
  0x12   :  { %v53_v28 = vadd.f32 %v51_v27, %v47_v23  ;;  %v62_v33 = vsel %vm58_vm0, %v54_v29, 0.0 }
  0x14   :  { %v56_v30 = vcombine.high %v53_v28, %v53_v28  ;;  %v59_v31 = vsel %vm58_vm0, %v53_v28, 0.0 }
  0x16   :  { %v60_v32 = vsel %vm58_vm0, %v56_v30, 0.0 }
  0x17   :  { %v61_v34 = vadd.f32 %v60_v32, %v59_v31 }
  0x19   :  { %v63_v35 = vadd.f32 %v62_v33, %v61_v34 }
  0x1b   :  { %64 = vadd.xlane.f32.xlu0 %v63_v35 }
  0xa8   :  { %v65_v36 = vpop.xlane.xlu0 %64 }
  0xa9   :  { %v66_v37 = vrot.slane %v65_v36, 4 }
  0xab   :  { %v67_v38 = vadd.f32 %v66_v37, %v65_v36 }
  0xad   :  { %v68_v39 = vrot.slane %v67_v38, 2 }
  0xaf   :  { %v69_v40 = vadd.f32 %v68_v39, %v67_v38 }
  0xb1   :  { %v70_v41 = vrot.slane %v69_v40, 1 }
  0xb3   :  { %v71_v42 = vadd.f32 %v70_v41, %v69_v40 }
  0xb5   :  { %90 = vpush %v71_v42 }
  0xe6   :  { %s91_s2 = spop %90 }
  0xe7   :  { %v73_v43 = vstv %s91_s2 }
  0xe8   :  { %75 = vst.msk [vmem:[#allocation2] sm:$0x1] %vm74_vm1, %v73_v43 }
  0xe9   :  { %104 = shalt.err (!%p101_p4)
}
  0xea   :  { %s105_s6 = scalar_lea.hbm %s180_s4, 16 }
  0xeb   :  { %p106_p5 = scmp.ne.s32.totalorder %s180_s4, %s105_s6  ;;  %p109_p6 = scmp.lt.u32.totalorder %s105_s6, %s180_s4 }
  0xed   :  { %p111_p7 = pnand %p109_p6, %p106_p5 }
  0xef   :  { %114 = shalt.err (!%p111_p7)
}
  0xf0   :  { %85 = dma.vmem_to_hbm [thread:$0]  %s83_s1, 16, %s180_s4, [#allocation3]  }
  0xf1   :  { %115 = dma.done.wait [#allocation3], 16  }
  0xf2   :  { %116 = vsyncadd [#allocation3], 4294967280 }
  0xf3   :  { %89 = vsyncpa [#allocation3], 1 }

</bundles_post_ra>
